<compile_context>
chip_gen: v6e
topology: v6e:2x2x1
jax: 0.10.0
libtpu: 0.0.40
codegen_flags: <defaults>
</compile_context>

<pallas_src>
import functools

import jax
import jax.numpy as jnp
from jax.experimental import pallas as pl
from jax.experimental.pallas import tpu as pltpu


def _round_up(x, m):
    return (x + m - 1) // m * m


def actor_kernel(obs_ref,
                 w1_ref, b1_ref, w2_ref, b2_ref, w3_ref, b3_ref,
                 wmu_ref, bmu_ref, out_ref):
    # obs_ref:  (TILE, n_obs_p)  bf16   (zero-padded features)
    # w*_ref:   (K_p,  N_p)      bf16   per-layer tight padding (128-multiples)
    # b*_ref:   (1,    N_p)      f32
    # out_ref:  (TILE, 128)      f32    (only first n_act lanes meaningful)
    x = obs_ref[...]

    # layer 1: Linear + ReLU  (padded obs lanes are zero -> exact)
    h = jnp.dot(x, w1_ref[...], preferred_element_type=jnp.float32) + b1_ref[...]
    h = jnp.maximum(h, 0.0)

    # layer 2: Linear + ReLU  (contraction at natural padded H width)
    h = jnp.dot(h.astype(jnp.bfloat16), w2_ref[...],
                preferred_element_type=jnp.float32) + b2_ref[...]
    h = jnp.maximum(h, 0.0)

    # layer 3: Linear + ReLU
    h = jnp.dot(h.astype(jnp.bfloat16), w3_ref[...],
                preferred_element_type=jnp.float32) + b3_ref[...]
    h = jnp.maximum(h, 0.0)

    # fc_mu: Linear + Tanh, 128-lane output
    mu = jnp.dot(h.astype(jnp.bfloat16), wmu_ref[...],
                 preferred_element_type=jnp.float32) + bmu_ref[...]
    out_ref[...] = jnp.tanh(mu).astype(out_ref.dtype)


def pack_actor_params(params):
    """Per-layer tight packing. Call ONCE at init / after a parameter update,
    NOT per forward step. Each weight (n_in, n_out) -> bf16 zero-padded to
    (round128(n_in), round128(n_out)); each bias (1, n_out) -> f32 zero-padded
    to (1, round128(n_out)). Zero padding propagates exact zeros through
    Linear+ReLU, so padded lanes stay 0 and are sliced off at the end."""
    packed = []
    for w, b in zip(params[0::2], params[1::2]):
        k_in, k_out = w.shape
        k_in_p, k_out_p = _round_up(k_in, 128), _round_up(k_out, 128)
        packed.append(
            jnp.pad(w, ((0, k_in_p - k_in), (0, k_out_p - k_out)))
            .astype(jnp.bfloat16))
        packed.append(
            jnp.pad(b, ((0, 0), (0, k_out_p - b.shape[1]))).astype(jnp.float32))
    return tuple(packed)


def _choose_tile(batch, max_tile=512):
    """Row tile: multiple of 8, capped at `max_tile`. For large batches keep
    >=2 grid steps (v7x megacore sharding + obs-DMA/compute overlap) while
    minimizing padded-row waste."""
    batch8 = _round_up(batch, 8)
    if batch8 <= 256:
        return batch8, batch8            # single step; nothing worth sharding
    best = None
    for t in (512, 256, 128):
        if t > max_tile:
            continue
        padded = _round_up(batch8, t)
        if padded // t < 2:
            continue                     # insist on >=2 grid steps
        key = (padded - batch8, -t)      # least padding, then fewest steps
        if best is None or key < best[0]:
            best = (key, t, padded)
    _, tile, batch_p = best
    return tile, batch_p


def actor_forward(obs, packed_params, *, n_act):
    """Fused actor MLP forward. `packed_params` comes from pack_actor_params.
    Returns f32 actions of shape (batch, n_act)."""
    batch, n_obs = obs.shape
    n_obs_p = packed_params[0].shape[0]           # 128-padded feature width
    n_out_p = packed_params[-1].shape[1]          # 128-padded action width

    tile, batch_p = _choose_tile(batch)

    obs_bf16 = obs.astype(jnp.bfloat16)
    if (batch_p, n_obs_p) != (batch, n_obs):
        obs_bf16 = jnp.pad(obs_bf16,
                           ((0, batch_p - batch), (0, n_obs_p - n_obs)))

    # VMEM budget: obs/out tiles are double-buffered by the pipeline; params
    # are resident (constant index map, fetched once). Floor 32 MiB.
    param_bytes = sum(int(p.size) * p.dtype.itemsize for p in packed_params)
    layer_widths = sum(int(w.shape[1]) for w in packed_params[0::2])
    act_bytes = tile * layer_widths * (4 + 2)        # f32 acts + bf16 casts
    io_bytes = 2 * tile * (n_obs_p * 2 + n_out_p * 4)
    vmem_limit = int(min(max(2 * (2 * param_bytes + act_bytes + io_bytes),
                             32 << 20), 96 << 20))

    param_specs = [pl.BlockSpec(p.shape, lambda i: (0, 0))   # resident in VMEM
                   for p in packed_params]

    out_padded = pl.pallas_call(
        actor_kernel,
        out_shape=jax.ShapeDtypeStruct((batch_p, n_out_p), jnp.float32),
        grid=(batch_p // tile,),
        in_specs=[pl.BlockSpec((tile, n_obs_p), lambda i: (i, 0))] + param_specs,
        out_specs=pl.BlockSpec((tile, n_out_p), lambda i: (i, 0)),
        compiler_params=pltpu.CompilerParams(
            dimension_semantics=("parallel",),
            vmem_limit_bytes=vmem_limit),
    )(obs_bf16, *packed_params)

    return out_padded[:batch, :n_act]


def init_actor_params(key, n_obs, n_act, hidden_dim, init_scale):
    """Parameter init mirroring the PyTorch module's shapes/init.
    Hidden Linears: uniform(-1/sqrt(fan_in), +); fc_mu: Normal(0, init_scale),
    bias = 0. Weights stored (n_in, n_out)."""
    h, h2, h4 = hidden_dim, hidden_dim // 2, hidden_dim // 4
    keys = jax.random.split(key, 7)

    def lin(kw, kb, n_in, n_out):
        bound = 1.0 / jnp.sqrt(float(n_in))
        w = jax.random.uniform(kw, (n_in, n_out), jnp.float32, -bound, bound)
        b = jax.random.uniform(kb, (1, n_out), jnp.float32, -bound, bound)
        return w, b

    w1, b1 = lin(keys[0], keys[1], n_obs, h)
    w2, b2 = lin(keys[2], keys[3], h, h2)
    w3, b3 = lin(keys[4], keys[5], h2, h4)
    wmu = init_scale * jax.random.normal(keys[6], (h4, n_act), jnp.float32)
    bmu = jnp.zeros((1, n_act), jnp.float32)
    return (w1, b1, w2, b2, w3, b3, wmu, bmu)


def reference_forward(obs, params):
    """Pure-JAX reference mirroring the kernel's bf16-operand / f32-accum math."""
    (w1, b1, w2, b2, w3, b3, wmu, bmu) = params
    bf = jnp.bfloat16
    x = obs.astype(bf)
    h = jnp.maximum(jnp.dot(x, w1.astype(bf),
                            preferred_element_type=jnp.float32) + b1, 0.0)
    h = jnp.maximum(jnp.dot(h.astype(bf), w2.astype(bf),
                            preferred_element_type=jnp.float32) + b2, 0.0)
    h = jnp.maximum(jnp.dot(h.astype(bf), w3.astype(bf),
                            preferred_element_type=jnp.float32) + b3, 0.0)
    return jnp.tanh(jnp.dot(h.astype(bf), wmu.astype(bf),
                            preferred_element_type=jnp.float32) + bmu)


if __name__ == "__main__":
    # Small shapes consistent with the module: num_envs (batch)=8, n_obs=32,
    # hidden_dim=32 (-> 16 -> 8), n_act=4.
    batch, n_obs, n_act, hidden_dim = 8, 32, 4, 32
    init_scale = 0.01

    key = jax.random.PRNGKey(0)
    k_obs, k_params = jax.random.split(key)
    obs = jax.random.normal(k_obs, (batch, n_obs), jnp.float32)
    params = init_actor_params(k_params, n_obs, n_act, hidden_dim, init_scale)

    packed = pack_actor_params(params)          # once, outside the hot path
    fwd = jax.jit(functools.partial(actor_forward, n_act=n_act))
    out = jax.block_until_ready(fwd(obs, packed))

    ref = reference_forward(obs, params)
    assert out.shape == (batch, n_act), out.shape
    err = float(jnp.max(jnp.abs(out - ref)))
    assert jnp.allclose(out, ref, atol=1e-3, rtol=1e-3), err

    print("KERNEL_OK")
</pallas_src>

<mosaic_0001>
module attributes {stable_mosaic.version = 11 : i64} {
  func.func @actor_kernel(%arg0: i32, %arg1: memref<8x128xbf16, #tpu.memory_space<vmem>>, %arg2: memref<128x128xbf16, #tpu.memory_space<vmem>>, %arg3: memref<1x128xf32, #tpu.memory_space<vmem>>, %arg4: memref<128x128xbf16, #tpu.memory_space<vmem>>, %arg5: memref<1x128xf32, #tpu.memory_space<vmem>>, %arg6: memref<128x128xbf16, #tpu.memory_space<vmem>>, %arg7: memref<1x128xf32, #tpu.memory_space<vmem>>, %arg8: memref<128x128xbf16, #tpu.memory_space<vmem>>, %arg9: memref<1x128xf32, #tpu.memory_space<vmem>>, %arg10: memref<8x128xf32, #tpu.memory_space<vmem>>) attributes {dimension_semantics = [#tpu.dimension_semantics<parallel>], iteration_bounds = array<i64: 1>, scalar_prefetch = 0 : i64, scratch_operands = 0 : i64, tpu.core_type = #tpu.core_type<tc>, window_params = [{transform_indices = @transform_0, window_bounds = array<i64: 8, 128>}, {pipeline_mode = #tpu.pipeline_mode<synchronous>, transform_indices = @transform_1, window_bounds = array<i64: 128, 128>}, {pipeline_mode = #tpu.pipeline_mode<synchronous>, transform_indices = @transform_2, window_bounds = array<i64: 1, 128>}, {pipeline_mode = #tpu.pipeline_mode<synchronous>, transform_indices = @transform_3, window_bounds = array<i64: 128, 128>}, {pipeline_mode = #tpu.pipeline_mode<synchronous>, transform_indices = @transform_4, window_bounds = array<i64: 1, 128>}, {pipeline_mode = #tpu.pipeline_mode<synchronous>, transform_indices = @transform_5, window_bounds = array<i64: 128, 128>}, {pipeline_mode = #tpu.pipeline_mode<synchronous>, transform_indices = @transform_6, window_bounds = array<i64: 1, 128>}, {pipeline_mode = #tpu.pipeline_mode<synchronous>, transform_indices = @transform_7, window_bounds = array<i64: 128, 128>}, {pipeline_mode = #tpu.pipeline_mode<synchronous>, transform_indices = @transform_8, window_bounds = array<i64: 1, 128>}, {transform_indices = @transform_9, window_bounds = array<i64: 8, 128>}]} {
    %c0 = arith.constant 0 : index
    %c0_0 = arith.constant 0 : index
    %0 = vector.load %arg1[%c0, %c0_0] : memref<8x128xbf16, #tpu.memory_space<vmem>>, vector<8x128xbf16>
    %c0_1 = arith.constant 0 : index
    %c0_2 = arith.constant 0 : index
    %1 = vector.load %arg2[%c0_1, %c0_2] : memref<128x128xbf16, #tpu.memory_space<vmem>>, vector<128x128xbf16>
    %cst = arith.constant dense<0.000000e+00> : vector<8x128xf32>
    %2 = tpu.matmul %0, %1, %cst {dimension_numbers = #tpu.dot_dimension_numbers<[1], [0], [0], [1], [0, 0, 1, 1], [], []>} : vector<8x128xbf16>, vector<128x128xbf16>, vector<8x128xf32> -> vector<8x128xf32>
    %c0_3 = arith.constant 0 : index
    %c0_4 = arith.constant 0 : index
    %3 = vector.load %arg3[%c0_3, %c0_4] : memref<1x128xf32, #tpu.memory_space<vmem>>, vector<1x128xf32>
    %4 = vector.broadcast %3 : vector<1x128xf32> to vector<8x128xf32>
    %5 = arith.addf %2, %4 : vector<8x128xf32>
    %cst_5 = arith.constant 0.000000e+00 : f32
    %6 = vector.broadcast %cst_5 : f32 to vector<8x128xf32>
    %7 = arith.maximumf %5, %6 : vector<8x128xf32>
    %8 = arith.truncf %7 : vector<8x128xf32> to vector<8x128xbf16>
    %c0_6 = arith.constant 0 : index
    %c0_7 = arith.constant 0 : index
    %9 = vector.load %arg4[%c0_6, %c0_7] : memref<128x128xbf16, #tpu.memory_space<vmem>>, vector<128x128xbf16>
    %cst_8 = arith.constant dense<0.000000e+00> : vector<8x128xf32>
    %10 = tpu.matmul %8, %9, %cst_8 {dimension_numbers = #tpu.dot_dimension_numbers<[1], [0], [0], [1], [0, 0, 1, 1], [], []>} : vector<8x128xbf16>, vector<128x128xbf16>, vector<8x128xf32> -> vector<8x128xf32>
    %c0_9 = arith.constant 0 : index
    %c0_10 = arith.constant 0 : index
    %11 = vector.load %arg5[%c0_9, %c0_10] : memref<1x128xf32, #tpu.memory_space<vmem>>, vector<1x128xf32>
    %12 = vector.broadcast %11 : vector<1x128xf32> to vector<8x128xf32>
    %13 = arith.addf %10, %12 : vector<8x128xf32>
    %cst_11 = arith.constant 0.000000e+00 : f32
    %14 = vector.broadcast %cst_11 : f32 to vector<8x128xf32>
    %15 = arith.maximumf %13, %14 : vector<8x128xf32>
    %16 = arith.truncf %15 : vector<8x128xf32> to vector<8x128xbf16>
    %c0_12 = arith.constant 0 : index
    %c0_13 = arith.constant 0 : index
    %17 = vector.load %arg6[%c0_12, %c0_13] : memref<128x128xbf16, #tpu.memory_space<vmem>>, vector<128x128xbf16>
    %cst_14 = arith.constant dense<0.000000e+00> : vector<8x128xf32>
    %18 = tpu.matmul %16, %17, %cst_14 {dimension_numbers = #tpu.dot_dimension_numbers<[1], [0], [0], [1], [0, 0, 1, 1], [], []>} : vector<8x128xbf16>, vector<128x128xbf16>, vector<8x128xf32> -> vector<8x128xf32>
    %c0_15 = arith.constant 0 : index
    %c0_16 = arith.constant 0 : index
    %19 = vector.load %arg7[%c0_15, %c0_16] : memref<1x128xf32, #tpu.memory_space<vmem>>, vector<1x128xf32>
    %20 = vector.broadcast %19 : vector<1x128xf32> to vector<8x128xf32>
    %21 = arith.addf %18, %20 : vector<8x128xf32>
    %cst_17 = arith.constant 0.000000e+00 : f32
    %22 = vector.broadcast %cst_17 : f32 to vector<8x128xf32>
    %23 = arith.maximumf %21, %22 : vector<8x128xf32>
    %24 = arith.truncf %23 : vector<8x128xf32> to vector<8x128xbf16>
    %c0_18 = arith.constant 0 : index
    %c0_19 = arith.constant 0 : index
    %25 = vector.load %arg8[%c0_18, %c0_19] : memref<128x128xbf16, #tpu.memory_space<vmem>>, vector<128x128xbf16>
    %cst_20 = arith.constant dense<0.000000e+00> : vector<8x128xf32>
    %26 = tpu.matmul %24, %25, %cst_20 {dimension_numbers = #tpu.dot_dimension_numbers<[1], [0], [0], [1], [0, 0, 1, 1], [], []>} : vector<8x128xbf16>, vector<128x128xbf16>, vector<8x128xf32> -> vector<8x128xf32>
    %c0_21 = arith.constant 0 : index
    %c0_22 = arith.constant 0 : index
    %27 = vector.load %arg9[%c0_21, %c0_22] : memref<1x128xf32, #tpu.memory_space<vmem>>, vector<1x128xf32>
    %28 = vector.broadcast %27 : vector<1x128xf32> to vector<8x128xf32>
    %29 = arith.addf %26, %28 : vector<8x128xf32>
    %30 = math.tanh %29 : vector<8x128xf32>
    %c0_23 = arith.constant 0 : index
    %c0_24 = arith.constant 0 : index
    %31 = vector.load %arg10[%c0_23, %c0_24] : memref<8x128xf32, #tpu.memory_space<vmem>>, vector<8x128xf32>
    tpu.vector_store %arg10[%c0_23, %c0_24], %30 {strides = array<i32>} : memref<8x128xf32, #tpu.memory_space<vmem>>, vector<8x128xf32>,
    return
  }
  func.func @transform_0(%arg0: i32) -> (i32, i32) {
    %c0_i32 = arith.constant 0 : i32
    %c0_i32_0 = arith.constant 0 : i32
    return %arg0, %c0_i32 : i32, i32
  }
  func.func @transform_1(%arg0: i32) -> (i32, i32) {
    %c0_i32 = arith.constant 0 : i32
    %c0_i32_0 = arith.constant 0 : i32
    %c0_i32_1 = arith.constant 0 : i32
    return %c0_i32, %c0_i32_0 : i32, i32
  }
  func.func @transform_2(%arg0: i32) -> (i32, i32) {
    %c0_i32 = arith.constant 0 : i32
    %c0_i32_0 = arith.constant 0 : i32
    %c0_i32_1 = arith.constant 0 : i32
    return %c0_i32, %c0_i32_0 : i32, i32
  }
  func.func @transform_3(%arg0: i32) -> (i32, i32) {
    %c0_i32 = arith.constant 0 : i32
    %c0_i32_0 = arith.constant 0 : i32
    %c0_i32_1 = arith.constant 0 : i32
    return %c0_i32, %c0_i32_0 : i32, i32
  }
  func.func @transform_4(%arg0: i32) -> (i32, i32) {
    %c0_i32 = arith.constant 0 : i32
    %c0_i32_0 = arith.constant 0 : i32
    %c0_i32_1 = arith.constant 0 : i32
    return %c0_i32, %c0_i32_0 : i32, i32
  }
  func.func @transform_5(%arg0: i32) -> (i32, i32) {
    %c0_i32 = arith.constant 0 : i32
    %c0_i32_0 = arith.constant 0 : i32
    %c0_i32_1 = arith.constant 0 : i32
    return %c0_i32, %c0_i32_0 : i32, i32
  }
  func.func @transform_6(%arg0: i32) -> (i32, i32) {
    %c0_i32 = arith.constant 0 : i32
    %c0_i32_0 = arith.constant 0 : i32
    %c0_i32_1 = arith.constant 0 : i32
    return %c0_i32, %c0_i32_0 : i32, i32
  }
  func.func @transform_7(%arg0: i32) -> (i32, i32) {
    %c0_i32 = arith.constant 0 : i32
    %c0_i32_0 = arith.constant 0 : i32
    %c0_i32_1 = arith.constant 0 : i32
    return %c0_i32, %c0_i32_0 : i32, i32
  }
  func.func @transform_8(%arg0: i32) -> (i32, i32) {
    %c0_i32 = arith.constant 0 : i32
    %c0_i32_0 = arith.constant 0 : i32
    %c0_i32_1 = arith.constant 0 : i32
    return %c0_i32, %c0_i32_0 : i32, i32
  }
  func.func @transform_9(%arg0: i32) -> (i32, i32) {
    %c0_i32 = arith.constant 0 : i32
    %c0_i32_0 = arith.constant 0 : i32
    return %arg0, %c0_i32 : i32, i32
  }
}

</mosaic_0001>

<bundles_post_ra>
// kernel: actor_forward.1
= control target key start
LH: loop header
LB: loop body
LE: loop exit
PB: predicated region body
PF: predicated region fallthrough
CT: control target
= control target key end

     0   :  { %14 = vsyncpa [#allocation3], 0  ;;  %s968_s0 = inlined_call_operand.vmem [shape: bf16[8,128], index: 0, kind: input, shape index: {}]   ;;  %s969_s1 = inlined_call_operand.hbm [shape: bf16[128,128], index: 1, kind: input, shape index: {}]   ;;  %s970_s2 = inlined_call_operand.vmem [shape: f32[1,128], index: 2, kind: input, shape index: {}]   ;;  %s971_s3 = inlined_call_operand.hbm [shape: bf16[128,128], index: 3, kind: input, shape index: {}]   ;;  %s972_s4 = inlined_call_operand.vmem [shape: f32[1,128], index: 4, kind: input, shape index: {}]   ;;  %s973_s5 = inlined_call_operand.hbm [shape: bf16[128,128], index: 5, kind: input, shape index: {}]   ;;  %s974_s6 = inlined_call_operand.vmem [shape: f32[1,128], index: 6, kind: input, shape index: {}]   ;;  %s975_s7 = inlined_call_operand.hbm [shape: bf16[128,128], index: 7, kind: input, shape index: {}]   ;;  %s976_s8 = inlined_call_operand.vmem [shape: f32[1,128], index: 8, kind: input, shape index: {}]   ;;  %s977_s9 = inlined_call_operand.vmem [shape: f32[8,128], index: 9, kind: output, shape index: {}]  }
   0x1   :  { %15 = vsyncpa [#allocation5], 0 }
   0x2   :  { %16 = vsyncpa [#allocation8], 0  ;;  %s828_s30 = smov [#allocation4]   ;;  %s829_s11 = smov [#allocation2]  }
   0x3   :  { %s38_s10 = sshll.u32 %s828_s30, 4  ;;  %s24_s12 = sshll.u32 %s829_s11, 4  ;;  %s39_s10 = int_to_ptr.vmem [resolvable:$true] %s38_s10  ;;  %s25_s12 = int_to_ptr.vmem [resolvable:$true] %s24_s12 }
   0x4   :  { %s750_s13 = scalar_lea.vmem %s39_s10, 1024  ;;  %p755_p1 = scmp.lt.s32.totalorder %s39_s10, %s39_s10 }
   0x5   :  { %p751_p0 = scmp.ne.s32.totalorder %s39_s10, %s750_s13  ;;  %p756_p2 = scmp.lt.s32.totalorder %s750_s13, %s750_s13 }
   0x7   :  { %p757_p3 = por %p756_p2, %p755_p1 }
   0x9   :  { %p758_p4 = pnand %p757_p3, %p751_p0 }
   0xb   :  { %761 = shalt.err (!%p758_p4)
}
   0xc   :  { %s830_s14 = smov 64   ;;  %s831_s15 = smov 4  }
   0xd   :  { %44 = dma.hbm_to_vmem [thread:$0]  %s971_s3, 1024, %s39_s10, [#allocation5], %s830_s14, %s830_s14, %s831_s15  }
   0xe   :  { %s770_s18 = scalar_lea.vmem %s25_s12, 1024  ;;  %p775_p6 = scmp.lt.s32.totalorder %s25_s12, %s25_s12 }
   0xf   :  { %p771_p5 = scmp.ne.s32.totalorder %s25_s12, %s770_s18  ;;  %p776_p7 = scmp.lt.s32.totalorder %s770_s18, %s770_s18 }
  0x11   :  { %p777_p8 = por %p776_p7, %p775_p6 }
  0x13   :  { %p778_p9 = pnand %p777_p8, %p771_p5 }
  0x15   :  { %781 = shalt.err (!%p778_p9)
}
  0x16   :  { %30 = dma.hbm_to_vmem [thread:$0]  %s969_s1, 1024, %s25_s12, [#allocation3], %s830_s14, %s830_s14, %s831_s15  }
  0x17   :  { %s832_s21 = smov [#allocation6]   ;;  %s833_s23 = smov [#allocation7]  }
  0x18   :  { %s52_s22 = sshll.u32 %s832_s21, 4  ;;  %s66_s24 = sshll.u32 %s833_s23, 4  ;;  %s53_s22 = int_to_ptr.vmem [resolvable:$true] %s52_s22  ;;  %s67_s24 = int_to_ptr.vmem [resolvable:$true] %s66_s24 }
  0x19   :  { %s790_s3 = scalar_lea.vmem %s53_s22, 1024  ;;  %p795_p11 = scmp.lt.s32.totalorder %s53_s22, %s53_s22 }
  0x1a   :  { %p791_p10 = scmp.ne.s32.totalorder %s53_s22, %s790_s3  ;;  %p796_p12 = scmp.lt.s32.totalorder %s790_s3, %s790_s3 }
  0x1c   :  { %p797_p13 = por %p796_p12, %p795_p11 }
  0x1e   :  { %p798_p0 = pnand %p797_p13, %p791_p10 }
  0x20   :  { %801 = shalt.err (!%p798_p0)
}
  0x21   :  { %58 = dma.hbm_to_vmem [thread:$0]  %s973_s5, 1024, %s53_s22, [#allocation5], %s830_s14, %s830_s14, %s831_s15  }
  0x22   :  { %s810_s1 = scalar_lea.vmem %s67_s24, 1024  ;;  %p815_p2 = scmp.lt.s32.totalorder %s67_s24, %s67_s24 }
  0x23   :  { %p811_p1 = scmp.ne.s32.totalorder %s67_s24, %s810_s1  ;;  %p816_p3 = scmp.lt.s32.totalorder %s810_s1, %s810_s1 }
  0x25   :  { %p817_p4 = por %p816_p3, %p815_p2 }
  0x27   :  { %p818_p5 = pnand %p817_p4, %p811_p1 }
  0x29   :  { %821 = shalt.err (!%p818_p5)
}
  0x2a   :  { %72 = dma.hbm_to_vmem [thread:$0]  %s975_s7, 1024, %s67_s24, [#allocation8], %s830_s14, %s830_s14, %s831_s15  }
  0x2b   :  { %822 = dma.done.wait [#allocation3], 1024  }
  0x2c   :  { %823 = vsyncadd [#allocation3], 4294966272 }
  0x2d   :  { %824 = dma.done.wait [#allocation5], 2048  }
  0x2e   :  { %825 = vsyncadd [#allocation5], 4294965248 }
  0x2f   :  { %826 = dma.done.wait [#allocation8], 1024  }
  0x30   :  { %827 = vsyncadd [#allocation8], 4294966272  ;;  %v834_v0 = vmov 0.0   ;;  %vm835_vm0 = vmmov 0   ;;  %v708_v1 = vld [vmem:[#allocation2 + $0x38] sm:$0xff]   ;;  %v709_v2 = vld [vmem:[#allocation2 + $0x30] sm:$0xff]  }
  0x31   :  { %620 = vmatprep.subr.bf16.mxu0 %v834_v0  ;;  %636 = vmatprep.mubr.msk.bf16.mxu0 %vm835_vm0, %v834_v0  ;;  %v710_v3 = vld [vmem:[#allocation2 + $0x28] sm:$0xff]   ;;  %v716_v4 = vld [vmem:[#allocation4 + $0x38] sm:$0xff]   ;;  %v711_v5 = vld [vmem:[#allocation2 + $0x20] sm:$0xff]  }
  0x32   :  { %640 = vmatprep.subr.bf16.mxu1 %v834_v0  ;;  %656 = vmatprep.mubr.msk.bf16.mxu1 %vm835_vm0, %v834_v0  ;;  %v717_v6 = vld [vmem:[#allocation4 + $0x30] sm:$0xff]   ;;  %v712_v7 = vld [vmem:[#allocation2 + $0x18] sm:$0xff]   ;;  %v718_v8 = vld [vmem:[#allocation4 + $0x28] sm:$0xff]  }
  0x33   :  { %621 = vmatpush3.bf16.msra.mxu0 %v708_v1  ;;  %641 = vmatpush3.bf16.msra.mxu1 %v716_v4  ;;  %v713_v9 = vld [vmem:[#allocation2 + $0x10] sm:$0xff]   ;;  %v719_v10 = vld [vmem:[#allocation4 + $0x20] sm:$0xff]   ;;  %v714_v11 = vld [vmem:[#allocation2 + $0x8] sm:$0xff]  }
  0x34   :  { %622 = vmatprep.subr.bf16.mxu0 %v834_v0  ;;  %642 = vmatprep.subr.bf16.mxu1 %v834_v0  ;;  %v720_v12 = vld [vmem:[#allocation4 + $0x18] sm:$0xff]   ;;  %v715_v13 = vld [vmem:[#allocation2] sm:$0xff]   ;;  %v721_v14 = vld [vmem:[#allocation4 + $0x10] sm:$0xff]  }
  0x35   :  { %v88_v15 = vld [vmem:[%s968_s0] sm:$0xf]  ;;  %v722_v16 = vld [vmem:[#allocation4 + $0x8] sm:$0xff]   ;;  %v724_v18 = vld [vmem:[#allocation6 + $0x38] sm:$0xff]  }
  0x36   :  { %v723_v17 = vld [vmem:[#allocation4] sm:$0xff]   ;;  %v725_v19 = vld [vmem:[#allocation6 + $0x30] sm:$0xff]   ;;  %v726_v20 = vld [vmem:[#allocation6 + $0x28] sm:$0xff]  }
  0x37   :  { %623 = vmatpush3.bf16.msra.mxu0 %v709_v2  ;;  %643 = vmatpush3.bf16.msra.mxu1 %v717_v6  ;;  %v727_v21 = vld [vmem:[#allocation6 + $0x20] sm:$0xff]   ;;  %v728_v22 = vld [vmem:[#allocation6 + $0x18] sm:$0xff]   ;;  %v729_v23 = vld [vmem:[#allocation6 + $0x10] sm:$0xff]  }
  0x38   :  { %624 = vmatprep.subr.bf16.mxu0 %v834_v0  ;;  %644 = vmatprep.subr.bf16.mxu1 %v834_v0  ;;  %v548_v24 = vld [vmem:[%s970_s2] ss:$0 sm:$0xff]  ;;  %v730_v32 = vld [vmem:[#allocation6 + $0x8] sm:$0xff]   ;;  %v732_v34 = vld [vmem:[#allocation7 + $0x38] sm:$0xff]  }
  0x39   :  { %v731_v33 = vld [vmem:[#allocation6] sm:$0xff]   ;;  %v733_v35 = vld [vmem:[#allocation7 + $0x30] sm:$0xff]   ;;  %v734_v36 = vld [vmem:[#allocation7 + $0x28] sm:$0xff]  }
  0x3a   :  { %v735_v37 = vld [vmem:[#allocation7 + $0x20] sm:$0xff]   ;;  %v736_v38 = vld [vmem:[#allocation7 + $0x18] sm:$0xff]   ;;  %v737_v39 = vld [vmem:[#allocation7 + $0x10] sm:$0xff]  }
  0x3b   :  { %625 = vmatpush3.bf16.msra.mxu0 %v710_v3  ;;  %645 = vmatpush3.bf16.msra.mxu1 %v718_v8  ;;  %v557_v40 = vld [vmem:[%s972_s4] ss:$0 sm:$0xff]  ;;  %v738_v48 = vld [vmem:[#allocation7 + $0x8] sm:$0xff]  }
  0x3c   :  { %626 = vmatprep.subr.bf16.mxu0 %v834_v0  ;;  %646 = vmatprep.subr.bf16.mxu1 %v834_v0  ;;  %v739_v49 = vld [vmem:[#allocation7] sm:$0xff]  }
  0x3d   :  { %v566_v50 = vld [vmem:[%s974_s6] ss:$0 sm:$0xff] }
  0x3e   :  { %v575_v58 = vld [vmem:[%s976_s8] ss:$0 sm:$0xff] }
  0x3f   :  { %627 = vmatpush3.bf16.msra.mxu0 %v711_v5  ;;  %647 = vmatpush3.bf16.msra.mxu1 %v719_v10 }
  0x40   :  { %628 = vmatprep.subr.bf16.mxu0 %v834_v0  ;;  %648 = vmatprep.subr.bf16.mxu1 %v834_v0 }
  0x43   :  { %629 = vmatpush3.bf16.msra.mxu0 %v712_v7  ;;  %649 = vmatpush3.bf16.msra.mxu1 %v720_v12 }
  0x44   :  { %630 = vmatprep.subr.bf16.mxu0 %v834_v0  ;;  %650 = vmatprep.subr.bf16.mxu1 %v834_v0 }
  0x47   :  { %631 = vmatpush3.bf16.msra.mxu0 %v713_v9  ;;  %651 = vmatpush3.bf16.msra.mxu1 %v721_v14 }
  0x48   :  { %632 = vmatprep.subr.bf16.mxu0 %v834_v0  ;;  %652 = vmatprep.subr.bf16.mxu1 %v834_v0 }
  0x4b   :  { %633 = vmatpush3.bf16.msra.mxu0 %v714_v11  ;;  %653 = vmatpush3.bf16.msra.mxu1 %v722_v16 }
  0x4c   :  { %634 = vmatprep.subr.bf16.mxu0 %v834_v0  ;;  %654 = vmatprep.subr.bf16.mxu1 %v834_v0 }
  0x4f   :  { %635 = vmatpush3.bf16.msra.mxu0 %v715_v13  ;;  %655 = vmatpush3.bf16.msra.mxu1 %v723_v17 }
  0x50   :  { %660 = vmatprep.subr.bf16.mxu0 %v834_v0  ;;  %680 = vmatprep.subr.bf16.mxu1 %v834_v0 }
  0x52   :  { %637 = vmatmul.mubr.bf16.vlgmr.msra.gmra.mxu0 %v88_v15 }
  0x53   :  { %676 = vmatprep.mubr.msk.bf16.mxu0 %vm835_vm0, %v834_v0  ;;  %661 = vmatpush3.bf16.msra.mxu0 %v724_v18 }
  0x54   :  { %662 = vmatprep.subr.bf16.mxu0 %v834_v0 }
  0x57   :  { %663 = vmatpush3.bf16.msra.mxu0 %v725_v19 }
  0x58   :  { %664 = vmatprep.subr.bf16.mxu0 %v834_v0 }
  0x5b   :  { %665 = vmatpush3.bf16.msra.mxu0 %v726_v20 }
  0x5c   :  { %666 = vmatprep.subr.bf16.mxu0 %v834_v0 }
  0x5f   :  { %667 = vmatpush3.bf16.msra.mxu0 %v727_v21 }
  0x60   :  { %668 = vmatprep.subr.bf16.mxu0 %v834_v0 }
  0x63   :  { %669 = vmatpush3.bf16.msra.mxu0 %v728_v22 }
  0x64   :  { %670 = vmatprep.subr.bf16.mxu0 %v834_v0 }
  0x67   :  { %671 = vmatpush3.bf16.msra.mxu0 %v729_v23 }
  0x68   :  { %672 = vmatprep.subr.bf16.mxu0 %v834_v0 }
  0x6b   :  { %673 = vmatpush3.bf16.msra.mxu0 %v730_v32 }
  0x6c   :  { %674 = vmatprep.subr.bf16.mxu0 %v834_v0 }
  0x6f   :  { %675 = vmatpush3.bf16.msra.mxu0 %v731_v33 }
 0x112   :  { %v194_v25 = vpop.f32.mrf.mxu0 }
 0x113   :  { %v195_v26 = vadd.f32 %v548_v24, %v194_v25 }
 0x114   :  { %v638_v27 = vpop.f32.mrf.mxu0 }
 0x115   :  { %v200_v28 = vmax.f32 %v195_v26, 0.0 }
 0x116   :  { %v197_v29 = vpop.f32.mrf.mxu0 }
 0x117   :  { %v201_v30 = vpack.c.bf16 %v200_v28, %v200_v28 }
 0x118   :  { %v639_v31 = vpop.f32.mrf.mxu0 }
 0x119   :  { %657 = vmatmul.mubr.bf16.vlgmr.msra.gmra.mxu1 %v201_v30 }
 0x11a   :  { %696 = vmatprep.mubr.msk.bf16.mxu1 %vm835_vm0, %v834_v0  ;;  %681 = vmatpush3.bf16.msra.mxu1 %v732_v34 }
 0x11b   :  { %682 = vmatprep.subr.bf16.mxu1 %v834_v0 }
 0x11e   :  { %683 = vmatpush3.bf16.msra.mxu1 %v733_v35 }
 0x11f   :  { %684 = vmatprep.subr.bf16.mxu1 %v834_v0 }
 0x122   :  { %685 = vmatpush3.bf16.msra.mxu1 %v734_v36 }
 0x123   :  { %686 = vmatprep.subr.bf16.mxu1 %v834_v0 }
 0x126   :  { %687 = vmatpush3.bf16.msra.mxu1 %v735_v37 }
 0x127   :  { %688 = vmatprep.subr.bf16.mxu1 %v834_v0 }
 0x12a   :  { %689 = vmatpush3.bf16.msra.mxu1 %v736_v38 }
 0x12b   :  { %690 = vmatprep.subr.bf16.mxu1 %v834_v0 }
 0x12e   :  { %691 = vmatpush3.bf16.msra.mxu1 %v737_v39 }
 0x12f   :  { %692 = vmatprep.subr.bf16.mxu1 %v834_v0 }
 0x132   :  { %693 = vmatpush3.bf16.msra.mxu1 %v738_v48 }
 0x133   :  { %694 = vmatprep.subr.bf16.mxu1 %v834_v0 }
 0x136   :  { %695 = vmatpush3.bf16.msra.mxu1 %v739_v49 }
 0x1d9   :  { %v307_v41 = vpop.f32.mrf.mxu1 }
 0x1da   :  { %v308_v42 = vadd.f32 %v557_v40, %v307_v41 }
 0x1db   :  { %v658_v43 = vpop.f32.mrf.mxu1 }
 0x1dc   :  { %v313_v44 = vmax.f32 %v308_v42, 0.0 }
 0x1dd   :  { %v310_v45 = vpop.f32.mrf.mxu1 }
 0x1de   :  { %v314_v46 = vpack.c.bf16 %v313_v44, %v313_v44 }
 0x1df   :  { %v659_v47 = vpop.f32.mrf.mxu1 }
 0x1e0   :  { %677 = vmatmul.mubr.bf16.vlgmr.msra.gmra.mxu0 %v314_v46 }
 0x2a0   :  { %v420_v51 = vpop.f32.mrf.mxu0 }
 0x2a1   :  { %v421_v52 = vadd.f32 %v566_v50, %v420_v51 }
 0x2a2   :  { %v678_v53 = vpop.f32.mrf.mxu0 }
 0x2a3   :  { %v426_v54 = vmax.f32 %v421_v52, 0.0 }
 0x2a4   :  { %v423_v55 = vpop.f32.mrf.mxu0 }
 0x2a5   :  { %v427_v56 = vpack.c.bf16 %v426_v54, %v426_v54 }
 0x2a6   :  { %v679_v57 = vpop.f32.mrf.mxu0 }
 0x2a7   :  { %697 = vmatmul.mubr.bf16.vlgmr.msra.gmra.mxu1 %v427_v56 }
 0x367   :  { %v533_v59 = vpop.f32.mrf.mxu1 }
 0x368   :  { %v534_v60 = vadd.f32 %v575_v58, %v533_v59 }
 0x369   :  { %v698_v61 = vpop.f32.mrf.mxu1 }
 0x36a   :  { %740 = vtanh.f32 %v534_v60 }
 0x36b   :  { %v536_v62 = vpop.f32.mrf.mxu1 }
 0x36d   :  { %v699_v63 = vpop.f32.mrf.mxu1 }
 0x377   :  { %v741_v0 = vpop.eup %740 }
 0x378   :  { %540 = vst [vmem:[%s977_s9] sm:$0xff] %v741_v0 }
 0x379   :  { %545 = vsyncpa [#allocation3], 1 }
 0x37a   :  { %546 = vsyncpa [#allocation5], 1 }
 0x37b   :  { %547 = vsyncpa [#allocation8], 1 }

</bundles_post_ra>
